<compile_context>
chip_gen: v5e
topology: v5e:2x2
jax: 0.10.0
libtpu: 0.0.40
codegen_flags: <defaults>
</compile_context>

<pallas_src>
import functools

import jax
import jax.numpy as jnp
from jax.experimental import pallas as pl
from jax.experimental.pallas import tpu as pltpu

LANES = 128
SUBLANES = 8
ALIGN = SUBLANES * LANES        # 1024 elements


def _round_down(x, m):
    return (x // m) * m


def _detect_num_tensorcores():
    """2 TensorCores per chip on v7x; 1 on v5e/v6e (unknown -> 1, always safe)."""
    try:
        kind = jax.devices()[0].device_kind.lower()
    except Exception:
        return 1
    if "v7" in kind or "tpu7" in kind:
        return 2
    return 1


@functools.partial(jax.jit, static_argnames=("block_rows",))
def l1_loss_masked(outputs, targets, *, block_rows=4096):
    assert outputs.shape == targets.shape
    n = outputs.size

    # Row-major flatten: free bitcast, no HBM copy. Keep native dtype (bf16/f16/f32);
    # the kernel upcasts in-register, halving HBM traffic for sub-f32 inputs.
    o_flat = outputs.reshape(-1)
    t_flat = targets.reshape(-1)

    if n % LANES != 0 or n < ALIGN:
        # TODO(synk): this pad materializes a copy of both inputs; it is only hit
        # for lane-unaligned (n % 128 != 0) or sub-1024-element tensors. Padded
        # targets are 0 and self-exclude via the (t > 0) mask. The common aligned
        # case below streams copy-free.
        pad = (-n) % ALIGN
        o_flat = jnp.pad(o_flat, (0, pad))
        t_flat = jnp.pad(t_flat, (0, pad))

    rows = o_flat.size // LANES           # >= 8 in all paths
    o2d = o_flat.reshape(rows, LANES)     # free row-major reshape
    t2d = t_flat.reshape(rows, LANES)

    # Biggest sublane-aligned tile <= block_rows that the input needs (br <= rows).
    br = max(SUBLANES, _round_down(min(block_rows, rows), SUBLANES))
    num_blocks = pl.cdiv(rows, br)

    num_cores = min(_detect_num_tensorcores(), num_blocks)
    steps_per_core = pl.cdiv(num_blocks, num_cores)

    has_phantom = steps_per_core * num_cores > num_blocks   # only possible when num_cores > 1
    ragged = (rows % br) != 0
    last = num_blocks - 1

    if has_phantom:
        def in_map(c, i):
            # Clamp so phantom blocks stay in bounds; they are skipped in-kernel.
            return (jnp.minimum(c * steps_per_core + i, last), 0)
    else:
        def in_map(c, i):
            return (c * steps_per_core + i, 0)

    def kernel(o_ref, t_ref, sum_ref, cnt_ref):
        c = pl.program_id(0)
        i = pl.program_id(1)

        @pl.when(i == 0)
        def _init():
            sum_ref[...] = jnp.zeros_like(sum_ref)
            cnt_ref[...] = jnp.zeros_like(cnt_ref)

        blk = c * steps_per_core + i      # logical (unclamped) block index

        def accumulate(row_mask=None):
            o = o_ref[...].astype(jnp.float32)
            t = t_ref[...].astype(jnp.float32)
            mask = t > 0.0
            if row_mask is not None:
                mask = mask & row_mask
            # NaN-safe select (Pallas padding of ragged blocks is unspecified data).
            diff = jnp.where(mask, jnp.abs(o - t), 0.0)
            # vreg-shaped accumulation: sublane-aligned reshape + VPU adds only;
            # no per-step cross-lane reduction.
            sum_ref[...] += jnp.sum(
                diff.reshape(br // SUBLANES, SUBLANES, LANES), axis=0, keepdims=True)
            cnt_ref[...] += jnp.sum(
                mask.astype(jnp.int32).reshape(br // SUBLANES, SUBLANES, LANES),
                axis=0, keepdims=True)

        if ragged:
            # Steady state: full blocks pay no bounds check.
            @pl.when(blk < last)
            def _full():
                accumulate()

            # Only the single ragged last block pays for the row-index iota mask.
            @pl.when(blk == last)
            def _tail():
                valid_rows = rows - last * br            # static Python int
                row_ids = jax.lax.broadcasted_iota(jnp.int32, (br, LANES), 0)
                accumulate(row_ids < valid_rows)
            # Phantom blocks (blk > last) skip both branches entirely.
        elif has_phantom:
            @pl.when(blk <= last)
            def _full():
                accumulate()
        else:
            accumulate()

    # Explicit VMEM budget: 2 inputs x 2 pipeline buffers + f32 temporaries,
    # floored at 32 MiB (above v5e's 16 MiB default scoped limit) and capped at
    # 48 MiB (safe under v7x's 64 MiB physical VMEM).
    in_block_bytes = br * LANES * jnp.dtype(o2d.dtype).itemsize
    vmem_limit = int(min(48 << 20, max(32 << 20, 8 * in_block_bytes + (8 << 20))))

    if num_cores > 1:
        # v7x: bind the leading axis to the 2 TensorCores explicitly.
        dim_sem = (getattr(pltpu, "CORE_PARALLEL", "parallel"), "arbitrary")
    else:
        dim_sem = ("arbitrary", "arbitrary")

    partial_sum, partial_cnt = pl.pallas_call(
        kernel,
        out_shape=(
            jax.ShapeDtypeStruct((num_cores, SUBLANES, LANES), jnp.float32),
            jax.ShapeDtypeStruct((num_cores, SUBLANES, LANES), jnp.int32),
        ),
        grid_spec=pltpu.PrefetchScalarGridSpec(
            num_scalar_prefetch=0,
            grid=(num_cores, steps_per_core),
            in_specs=[
                pl.BlockSpec((br, LANES), in_map),
                pl.BlockSpec((br, LANES), in_map),
            ],
            out_specs=(
                pl.BlockSpec((1, SUBLANES, LANES), lambda c, i: (c, 0, 0)),
                pl.BlockSpec((1, SUBLANES, LANES), lambda c, i: (c, 0, 0)),
            ),
        ),
        compiler_params=pltpu.CompilerParams(
            dimension_semantics=dim_sem,
            vmem_limit_bytes=vmem_limit,
        ),
    )(o2d, t2d)

    total_sum = jnp.sum(partial_sum)                          # tiny final reduce
    # Exact int32 lane counts in-kernel; widen to f32 for the final 2048-element
    # reduce so totals past 2**31 masked elements don't overflow.
    total_cnt = jnp.sum(partial_cnt.astype(jnp.float32))
    return total_sum / total_cnt


def _reference(outputs, targets):
    mask = targets > 0.0
    diff = jnp.abs(outputs - targets)
    return jnp.sum(jnp.where(mask, diff, 0.0)) / jnp.sum(mask)


if __name__ == "__main__":
    key = jax.random.PRNGKey(0)
    k1, k2 = jax.random.split(key)

    # NCHW, small shapes: batch=2, channels=4, spatial=16x16
    shape = (2, 4, 16, 16)
    outputs = jax.random.normal(k1, shape, dtype=jnp.float32)
    # targets with a mix of positive and non-positive values so the mask matters
    targets = jax.random.normal(k2, shape, dtype=jnp.float32)

    result = l1_loss_masked(outputs, targets)
    jax.block_until_ready(result)

    ref = _reference(outputs, targets)
    assert jnp.allclose(result, ref, rtol=1e-5, atol=1e-6), (result, ref)

    print("KERNEL_OK")
</pallas_src>

<mosaic_0001>
module attributes {stable_mosaic.version = 11 : i64} {
  func.func @kernel(%arg0: i32, %arg1: i32, %arg2: memref<16x128xf32, #tpu.memory_space<vmem>>, %arg3: memref<16x128xf32, #tpu.memory_space<vmem>>, %arg4: memref<1x8x128xf32, #tpu.memory_space<vmem>>, %arg5: memref<1x8x128xi32, #tpu.memory_space<vmem>>) attributes {dimension_semantics = [#tpu.dimension_semantics<arbitrary>, #tpu.dimension_semantics<arbitrary>], iteration_bounds = array<i64: 1, 1>, scalar_prefetch = 0 : i64, scratch_operands = 0 : i64, tpu.core_type = #tpu.core_type<tc>, window_params = [{transform_indices = @transform_0, window_bounds = array<i64: 16, 128>}, {transform_indices = @transform_1, window_bounds = array<i64: 16, 128>}, {transform_indices = @transform_2, window_bounds = array<i64: 1, 8, 128>}, {transform_indices = @transform_3, window_bounds = array<i64: 1, 8, 128>}]} {
    %c0_i32 = arith.constant 0 : i32
    %0 = arith.cmpi eq, %arg1, %c0_i32 : i32
    %1 = arith.extui %0 : i1 to i32
    %c0_i32_0 = arith.constant 0 : i32
    %2 = arith.cmpi ne, %1, %c0_i32_0 : i32
    scf.if %2 {
      %cst_19 = arith.constant 0.000000e+00 : f32
      %24 = vector.broadcast %cst_19 : f32 to vector<1x8x128xf32>
      %c0_20 = arith.constant 0 : index
      %c0_21 = arith.constant 0 : index
      %c0_22 = arith.constant 0 : index
      %25 = vector.load %arg4[%c0_20, %c0_21, %c0_22] : memref<1x8x128xf32, #tpu.memory_space<vmem>>, vector<1x8x128xf32>
      tpu.vector_store %arg4[%c0_20, %c0_21, %c0_22], %24 {strides = array<i32>} : memref<1x8x128xf32, #tpu.memory_space<vmem>>, vector<1x8x128xf32>,
      %c0_i32_23 = arith.constant 0 : i32
      %26 = vector.broadcast %c0_i32_23 : i32 to vector<1x8x128xi32>
      %c0_24 = arith.constant 0 : index
      %c0_25 = arith.constant 0 : index
      %c0_26 = arith.constant 0 : index
      %27 = vector.load %arg5[%c0_24, %c0_25, %c0_26] : memref<1x8x128xi32, #tpu.memory_space<vmem>>, vector<1x8x128xi32>
      tpu.vector_store %arg5[%c0_24, %c0_25, %c0_26], %26 {strides = array<i32>} : memref<1x8x128xi32, #tpu.memory_space<vmem>>, vector<1x8x128xi32>,
    } else {
    }
    %c0 = arith.constant 0 : index
    %c0_1 = arith.constant 0 : index
    %3 = vector.load %arg2[%c0, %c0_1] : memref<16x128xf32, #tpu.memory_space<vmem>>, vector<16x128xf32>
    %c0_2 = arith.constant 0 : index
    %c0_3 = arith.constant 0 : index
    %4 = vector.load %arg3[%c0_2, %c0_3] : memref<16x128xf32, #tpu.memory_space<vmem>>, vector<16x128xf32>
    %cst = arith.constant 0.000000e+00 : f32
    %5 = vector.broadcast %cst : f32 to vector<16x128xf32>
    %6 = arith.cmpf ogt, %4, %5 : vector<16x128xf32>
    %7 = arith.subf %3, %4 : vector<16x128xf32>
    %8 = math.absf %7 : vector<16x128xf32>
    %cst_4 = arith.constant 0.000000e+00 : f32
    %9 = vector.broadcast %cst_4 : f32 to vector<16x128xf32>
    %10 = arith.select %6, %8, %9 : vector<16x128xi1>, vector<16x128xf32>
    %c0_5 = arith.constant 0 : index
    %c0_6 = arith.constant 0 : index
    %c0_7 = arith.constant 0 : index
    %11 = vector.load %arg4[%c0_5, %c0_6, %c0_7] : memref<1x8x128xf32, #tpu.memory_space<vmem>>, vector<1x8x128xf32>
    %12 = vector.shape_cast %10 : vector<16x128xf32> to vector<2x8x128xf32>
    %cst_8 = arith.constant dense<0.000000e+00> : vector<8x128xf32>
    %13 = vector.multi_reduction <add>, %12, %cst_8 [0] : vector<2x8x128xf32> to vector<8x128xf32>
    %14 = vector.shape_cast %13 : vector<8x128xf32> to vector<1x8x128xf32>
    %15 = arith.addf %11, %14 : vector<1x8x128xf32>
    %c0_9 = arith.constant 0 : index
    %c0_10 = arith.constant 0 : index
    %c0_11 = arith.constant 0 : index
    %16 = vector.load %arg4[%c0_9, %c0_10, %c0_11] : memref<1x8x128xf32, #tpu.memory_space<vmem>>, vector<1x8x128xf32>
    tpu.vector_store %arg4[%c0_9, %c0_10, %c0_11], %15 {strides = array<i32>} : memref<1x8x128xf32, #tpu.memory_space<vmem>>, vector<1x8x128xf32>,
    %c0_12 = arith.constant 0 : index
    %c0_13 = arith.constant 0 : index
    %c0_14 = arith.constant 0 : index
    %17 = vector.load %arg5[%c0_12, %c0_13, %c0_14] : memref<1x8x128xi32, #tpu.memory_space<vmem>>, vector<1x8x128xi32>
    %18 = arith.extui %6 : vector<16x128xi1> to vector<16x128xi32>
    %19 = vector.shape_cast %18 : vector<16x128xi32> to vector<2x8x128xi32>
    %cst_15 = arith.constant dense<0> : vector<8x128xi32>
    %20 = vector.multi_reduction <add>, %19, %cst_15 [0] : vector<2x8x128xi32> to vector<8x128xi32>
    %21 = vector.shape_cast %20 : vector<8x128xi32> to vector<1x8x128xi32>
    %22 = arith.addi %17, %21 : vector<1x8x128xi32>
    %c0_16 = arith.constant 0 : index
    %c0_17 = arith.constant 0 : index
    %c0_18 = arith.constant 0 : index
    %23 = vector.load %arg5[%c0_16, %c0_17, %c0_18] : memref<1x8x128xi32, #tpu.memory_space<vmem>>, vector<1x8x128xi32>
    tpu.vector_store %arg5[%c0_16, %c0_17, %c0_18], %22 {strides = array<i32>} : memref<1x8x128xi32, #tpu.memory_space<vmem>>, vector<1x8x128xi32>,
    return
  }
  func.func @transform_0(%arg0: i32, %arg1: i32) -> (i32, i32) {
    %c1_i32 = arith.constant 1 : i32
    %0 = arith.muli %arg0, %c1_i32 : i32
    %1 = arith.addi %0, %arg1 : i32
    %c0_i32 = arith.constant 0 : i32
    %c0_i32_0 = arith.constant 0 : i32
    return %1, %c0_i32 : i32, i32
  }
  func.func @transform_1(%arg0: i32, %arg1: i32) -> (i32, i32) {
    %c1_i32 = arith.constant 1 : i32
    %0 = arith.muli %arg0, %c1_i32 : i32
    %1 = arith.addi %0, %arg1 : i32
    %c0_i32 = arith.constant 0 : i32
    %c0_i32_0 = arith.constant 0 : i32
    return %1, %c0_i32 : i32, i32
  }
  func.func @transform_2(%arg0: i32, %arg1: i32) -> (i32, i32, i32) {
    %c0_i32 = arith.constant 0 : i32
    %c0_i32_0 = arith.constant 0 : i32
    %c0_i32_1 = arith.constant 0 : i32
    return %arg0, %c0_i32, %c0_i32_0 : i32, i32, i32
  }
  func.func @transform_3(%arg0: i32, %arg1: i32) -> (i32, i32, i32) {
    %c0_i32 = arith.constant 0 : i32
    %c0_i32_0 = arith.constant 0 : i32
    %c0_i32_1 = arith.constant 0 : i32
    return %arg0, %c0_i32, %c0_i32_0 : i32, i32, i32
  }
}

</mosaic_0001>

<bundles_post_ra>
// kernel: l1_loss_masked.1
= control target key start
LH: loop header
LB: loop body
LE: loop exit
PB: predicated region body
PF: predicated region fallthrough
CT: control target
= control target key end

     0   :  { %v107_v6 = vmov 0   ;;  %s146_s0 = inlined_call_operand.vmem [shape: f32[16,128], index: 0, kind: input, shape index: {}]   ;;  %s147_s1 = inlined_call_operand.vmem [shape: f32[16,128], index: 1, kind: input, shape index: {}]   ;;  %s148_s3 = inlined_call_operand.vmem [shape: s32[1,8,128], index: 3, kind: output, shape index: {1}]   ;;  %s149_s2 = inlined_call_operand.vmem [shape: f32[1,8,128], index: 2, kind: output, shape index: {0}]  }
   0x1   :  { %v63_v0 = vld [vmem:[%s146_s0] sm:$0xff]  ;;  %v64_v1 = vld [vmem:[%s146_s0 + $0x8] sm:$0xff] }
   0x2   :  { %v65_v2 = vld [vmem:[%s147_s1] sm:$0xff]  ;;  %v66_v3 = vld [vmem:[%s147_s1 + $0x8] sm:$0xff] }
   0x3   :  { %vm67_vm0 = vcmp.gt.f32.partialorder %v65_v2, 0.0  ;;  %v69_v4 = vsub.f32 %v63_v0, %v65_v2  ;;  %vm68_vm1 = vcmp.gt.f32.partialorder %v66_v3, 0.0  ;;  %v70_v5 = vsub.f32 %v64_v1, %v66_v3 }
   0x4   :  { %v80_v7 = vsel %vm67_vm0, 1, %v107_v6  ;;  %v81_v9 = vsel %vm68_vm1, 1, %v107_v6 }
   0x5   :  { %v71_v8 = vand.u32 2147483647, %v69_v4  ;;  %v72_v10 = vand.u32 2147483647, %v70_v5  ;;  %v82_v11 = vadd.s32 %v81_v9, %v80_v7 }
   0x7   :  { %v73_v12 = vsel %vm67_vm0, %v71_v8, 0.0  ;;  %v74_v13 = vsel %vm68_vm1, %v72_v10, 0.0  ;;  %84 = vst [vmem:[%s148_s3] sm:$0xff] %v82_v11 }
   0x8   :  { %v76_v14 = vadd.f32 %v74_v13, %v73_v12 }
   0xa   :  { %78 = vst [vmem:[%s149_s2] sm:$0xff] %v76_v14 }

</bundles_post_ra>
